<compile_context>
chip_gen: v7x
topology: tpu7x:2x2x1
jax: 0.10.0
libtpu: 0.0.40
codegen_flags: <defaults>
</compile_context>

<pallas_src>
import jax
import jax.numpy as jnp
from jax.experimental import pallas as pl
from jax.experimental.pallas import tpu as pltpu

IN_DIM = 20
HIDDEN_DIM = 256
OUT_DIM = 10
MAX_TB = 1024          # batch tile cap (multiple of 256)


def _round_up(x, m):
    return ((x + m - 1) // m) * m


def _select_tb(B):
    # Multiple of 256 rows per step; aim for >= 2 grid steps at larger B so
    # the "parallel" batch axis can be split across both v7x TensorCores.
    tb = _round_up(pl.cdiv(B, 2), 256)
    return max(256, min(MAX_TB, tb))


def mlp_kernel(x_ref, w1_ref, b1_ref, w2_ref, b2_ref, o_ref):
    # MXU operand dtype follows the weights (f32 by default, bf16 if the
    # caller pre-cast them via prepare_params); accumulation is always f32.
    cd = w1_ref.dtype
    # Linear(20 -> 256) + bias + ReLU
    h = jnp.dot(x_ref[...].astype(cd), w1_ref[...],
                preferred_element_type=jnp.float32)
    h = jnp.maximum(h + b1_ref[...], 0.0)
    # Linear(256 -> 10) + bias
    y = jnp.dot(h.astype(cd), w2_ref[...],
                preferred_element_type=jnp.float32)
    o_ref[...] = (y + b2_ref[...]).astype(o_ref.dtype)


def mlp_forward(x, params):
    """x: (B, 20); params = (w1 (20,256), b1 (1,256), w2 (256,10), b2 (1,10))."""
    w1, b1, w2, b2 = params
    B = x.shape[0]

    tb = _select_tb(B)
    n_steps = pl.cdiv(B, tb)

    itemsize = jnp.dtype(x.dtype).itemsize
    w_itemsize = jnp.dtype(w1.dtype).itemsize
    cost = pl.CostEstimate(
        flops=2 * B * (IN_DIM * HIDDEN_DIM + HIDDEN_DIM * OUT_DIM),
        transcendentals=0,
        bytes_accessed=(
            itemsize * B * IN_DIM                              # x
            + w_itemsize * (IN_DIM * HIDDEN_DIM + HIDDEN_DIM * OUT_DIM)  # w1, w2
            + 4 * (HIDDEN_DIM + OUT_DIM)                       # b1, b2 (f32)
            + 4 * B * OUT_DIM                                  # out (f32)
        ),
    )

    return pl.pallas_call(
        mlp_kernel,
        out_shape=jax.ShapeDtypeStruct((B, OUT_DIM), jnp.float32),
        grid=(n_steps,),
        in_specs=[
            # x tiled along batch; weights/biases resident (constant index_map).
            pl.BlockSpec((tb, IN_DIM), lambda i: (i, 0)),
            pl.BlockSpec((IN_DIM, HIDDEN_DIM), lambda i: (0, 0)),
            pl.BlockSpec((1, HIDDEN_DIM), lambda i: (0, 0)),
            pl.BlockSpec((HIDDEN_DIM, OUT_DIM), lambda i: (0, 0)),
            pl.BlockSpec((1, OUT_DIM), lambda i: (0, 0)),
        ],
        # Narrow (tb, 10) output block: last block dim equals the full array
        # dim, so no lane padding, no post-kernel slice, minimal HBM writeback.
        out_specs=pl.BlockSpec((tb, OUT_DIM), lambda i: (i, 0)),
        compiler_params=pltpu.CompilerParams(
            dimension_semantics=("parallel",),  # batch axis over v7x's 2 TCs
        ),
        cost_estimate=cost,
    )(x, w1, b1, w2, b2)


def init_params(key):
    # Deterministic synthetic init mirroring nn.Linear's U(-1/sqrt(fan_in), +).
    k1, k2, k3, k4 = jax.random.split(key, 4)
    lim1 = 1.0 / jnp.sqrt(jnp.float32(IN_DIM))
    lim2 = 1.0 / jnp.sqrt(jnp.float32(HIDDEN_DIM))
    # Stored as (in, out) = torch weight transposed.
    w1 = jax.random.uniform(k1, (IN_DIM, HIDDEN_DIM), jnp.float32, -lim1, lim1)
    b1 = jax.random.uniform(k2, (1, HIDDEN_DIM), jnp.float32, -lim1, lim1)
    w2 = jax.random.uniform(k3, (HIDDEN_DIM, OUT_DIM), jnp.float32, -lim2, lim2)
    b2 = jax.random.uniform(k4, (1, OUT_DIM), jnp.float32, -lim2, lim2)
    return w1, b1, w2, b2


def prepare_params(params, use_bf16=False):
    """One-time param prep (hoisted out of the per-call hot path).

    With use_bf16=True the matmul operands go through the bf16 MXU path
    (v6e/v7x fast path); bias add / ReLU / output stay f32.
    """
    w1, b1, w2, b2 = params
    if use_bf16:
        w1 = w1.astype(jnp.bfloat16)
        w2 = w2.astype(jnp.bfloat16)
    return w1, b1, w2, b2


if __name__ == "__main__":
    key = jax.random.PRNGKey(0)
    kx, kp = jax.random.split(key)

    # Matches the module's usage: X = torch.rand(2, 20)
    x = jax.random.uniform(kx, (2, IN_DIM), jnp.float32)
    params = init_params(kp)
    w1, b1, w2, b2 = params

    out = jax.block_until_ready(mlp_forward(x, params))

    # Pure-JAX reference of the forward semantics.
    ref = jnp.maximum(x @ w1 + b1, 0.0) @ w2 + b2
    assert out.shape == (2, OUT_DIM)
    assert jnp.allclose(out, ref, atol=1e-5, rtol=1e-5)

    # Multi-step grid path (B spans 2 grid steps) for coverage.
    xb = jax.random.uniform(kx, (600, IN_DIM), jnp.float32)
    outb = jax.block_until_ready(mlp_forward(xb, params))
    refb = jnp.maximum(xb @ w1 + b1, 0.0) @ w2 + b2
    assert outb.shape == (600, OUT_DIM)
    assert jnp.allclose(outb, refb, atol=1e-4, rtol=1e-4)

    # bf16-operand MXU path (hoisted weight cast), looser tolerance.
    bf16_params = prepare_params(params, use_bf16=True)
    outbf = jax.block_until_ready(mlp_forward(xb, bf16_params))
    assert outbf.shape == (600, OUT_DIM)
    assert jnp.allclose(outbf, refb, atol=5e-2, rtol=5e-2)

    print("KERNEL_OK")
</pallas_src>

<mosaic_0001>
module attributes {stable_mosaic.version = 11 : i64} {
  func.func @mlp_kernel(%arg0: i32, %arg1: memref<256x20xf32, #tpu.memory_space<vmem>>, %arg2: memref<20x256xf32, #tpu.memory_space<vmem>>, %arg3: memref<1x256xf32, #tpu.memory_space<vmem>>, %arg4: memref<256x10xf32, #tpu.memory_space<vmem>>, %arg5: memref<1x10xf32, #tpu.memory_space<vmem>>, %arg6: memref<256x10xf32, #tpu.memory_space<vmem>>) attributes {dimension_semantics = [#tpu.dimension_semantics<parallel>], iteration_bounds = array<i64: 1>, scalar_prefetch = 0 : i64, scratch_operands = 0 : i64, tpu.core_type = #tpu.core_type<tc>, window_params = [{transform_indices = @transform_0, window_bounds = array<i64: 256, 20>}, {pipeline_mode = #tpu.pipeline_mode<synchronous>, transform_indices = @transform_1, window_bounds = array<i64: 20, 256>}, {pipeline_mode = #tpu.pipeline_mode<synchronous>, transform_indices = @transform_2, window_bounds = array<i64: 1, 256>}, {pipeline_mode = #tpu.pipeline_mode<synchronous>, transform_indices = @transform_3, window_bounds = array<i64: 256, 10>}, {pipeline_mode = #tpu.pipeline_mode<synchronous>, transform_indices = @transform_4, window_bounds = array<i64: 1, 10>}, {transform_indices = @transform_5, window_bounds = array<i64: 256, 10>}]} {
    %c0 = arith.constant 0 : index
    %c0_0 = arith.constant 0 : index
    %0 = vector.load %arg1[%c0, %c0_0] : memref<256x20xf32, #tpu.memory_space<vmem>>, vector<256x20xf32>
    %c0_1 = arith.constant 0 : index
    %c0_2 = arith.constant 0 : index
    %1 = vector.load %arg2[%c0_1, %c0_2] : memref<20x256xf32, #tpu.memory_space<vmem>>, vector<20x256xf32>
    %cst = arith.constant dense<0.000000e+00> : vector<256x256xf32>
    %2 = tpu.matmul %0, %1, %cst {dimension_numbers = #tpu.dot_dimension_numbers<[1], [0], [0], [1], [0, 0, 1, 1], [], []>} : vector<256x20xf32>, vector<20x256xf32>, vector<256x256xf32> -> vector<256x256xf32>
    %c0_3 = arith.constant 0 : index
    %c0_4 = arith.constant 0 : index
    %3 = vector.load %arg3[%c0_3, %c0_4] : memref<1x256xf32, #tpu.memory_space<vmem>>, vector<1x256xf32>
    %4 = vector.broadcast %3 : vector<1x256xf32> to vector<256x256xf32>
    %5 = arith.addf %2, %4 : vector<256x256xf32>
    %cst_5 = arith.constant 0.000000e+00 : f32
    %6 = vector.broadcast %cst_5 : f32 to vector<256x256xf32>
    %7 = arith.maximumf %5, %6 : vector<256x256xf32>
    %c0_6 = arith.constant 0 : index
    %c0_7 = arith.constant 0 : index
    %8 = vector.load %arg4[%c0_6, %c0_7] : memref<256x10xf32, #tpu.memory_space<vmem>>, vector<256x10xf32>
    %cst_8 = arith.constant dense<0.000000e+00> : vector<256x10xf32>
    %9 = tpu.matmul %7, %8, %cst_8 {dimension_numbers = #tpu.dot_dimension_numbers<[1], [0], [0], [1], [0, 0, 1, 1], [], []>} : vector<256x256xf32>, vector<256x10xf32>, vector<256x10xf32> -> vector<256x10xf32>
    %c0_9 = arith.constant 0 : index
    %c0_10 = arith.constant 0 : index
    %10 = vector.load %arg5[%c0_9, %c0_10] : memref<1x10xf32, #tpu.memory_space<vmem>>, vector<1x10xf32>
    %11 = vector.broadcast %10 : vector<1x10xf32> to vector<256x10xf32>
    %12 = arith.addf %9, %11 : vector<256x10xf32>
    %c0_11 = arith.constant 0 : index
    %c0_12 = arith.constant 0 : index
    %13 = vector.load %arg6[%c0_11, %c0_12] : memref<256x10xf32, #tpu.memory_space<vmem>>, vector<256x10xf32>
    tpu.vector_store %arg6[%c0_11, %c0_12], %12 {strides = array<i32>} : memref<256x10xf32, #tpu.memory_space<vmem>>, vector<256x10xf32>,
    return
  }
  func.func @transform_0(%arg0: i32) -> (i32, i32) {
    %c0_i32 = arith.constant 0 : i32
    %c0_i32_0 = arith.constant 0 : i32
    return %arg0, %c0_i32 : i32, i32
  }
  func.func @transform_1(%arg0: i32) -> (i32, i32) {
    %c0_i32 = arith.constant 0 : i32
    %c0_i32_0 = arith.constant 0 : i32
    %c0_i32_1 = arith.constant 0 : i32
    return %c0_i32, %c0_i32_0 : i32, i32
  }
  func.func @transform_2(%arg0: i32) -> (i32, i32) {
    %c0_i32 = arith.constant 0 : i32
    %c0_i32_0 = arith.constant 0 : i32
    %c0_i32_1 = arith.constant 0 : i32
    return %c0_i32, %c0_i32_0 : i32, i32
  }
  func.func @transform_3(%arg0: i32) -> (i32, i32) {
    %c0_i32 = arith.constant 0 : i32
    %c0_i32_0 = arith.constant 0 : i32
    %c0_i32_1 = arith.constant 0 : i32
    return %c0_i32, %c0_i32_0 : i32, i32
  }
  func.func @transform_4(%arg0: i32) -> (i32, i32) {
    %c0_i32 = arith.constant 0 : i32
    %c0_i32_0 = arith.constant 0 : i32
    %c0_i32_1 = arith.constant 0 : i32
    return %c0_i32, %c0_i32_0 : i32, i32
  }
  func.func @transform_5(%arg0: i32) -> (i32, i32) {
    %c0_i32 = arith.constant 0 : i32
    %c0_i32_0 = arith.constant 0 : i32
    return %arg0, %c0_i32 : i32, i32
  }
}

</mosaic_0001>

<bundles_post_ra>
// kernel: tpu_custom_call.1
= control target key start
LH: loop header
LB: loop body
LE: loop exit
PB: predicated region body
PF: predicated region fallthrough
CT: control target
= control target key end

     0   :  { %10 = vsyncpa [#allocation3], 0  ;;  %v957_v5 = vmov 0.0   ;;  %vm168_vm0 = vcmask 1043456   ;;  %vm71_vm1 = vcmask 162816   ;;  %v958_v10 = vmov 0.0|0.0   ;;  %s1450_s0 = inlined_call_operand.vmem [shape: f32[2,20], index: 0, kind: input, shape index: {}]   ;;  %s1451_s1 = inlined_call_operand.vmem [shape: f32[20,256], index: 1, kind: input, shape index: {}]   ;;  %s1452_s2 = inlined_call_operand.vmem [shape: f32[1,256], index: 2, kind: input, shape index: {}]   ;;  %s1453_s3 = inlined_call_operand.vmem [shape: f32[256,10], index: 3, kind: input, shape index: {}]   ;;  %s1454_s4 = inlined_call_operand.vmem [shape: f32[1,10], index: 4, kind: input, shape index: {}]   ;;  %s1455_s5 = inlined_call_operand.hbm [shape: f32[2,10], index: 5, kind: output, shape index: {}]  }
   0x1   :  { %v54_v0 = vld [vmem:[%s1451_s1 + $0x8] sm:$0xff]  ;;  %v56_v1 = vld [vmem:[%s1451_s1 + $0x18] sm:$0xff]  ;;  %v53_v3 = vld [vmem:[%s1451_s1] sm:$0xff]  ;;  %239 = vmatprep.mubr.f32.mxu0 %v957_v5  ;;  %896 = vmatprep.subr.bf16.mxu1 %v958_v10  ;;  %vm760_vm2 = vcmask 80896  }
   0x2   :  { %v844_v2 = vpack.c.bf16 %v56_v1, %v54_v0  ;;  %v55_v4 = vld [vmem:[%s1451_s1 + $0x10] sm:$0xff]  ;;  %v58_v7 = vld [vmem:[%s1451_s1 + $0x28] sm:$0xf]  ;;  %v57_v8 = vld [vmem:[%s1451_s1 + $0x20] sm:$0xf] }
   0x3   :  { %v846_v6 = vpack.c.bf16 %v55_v4, %v53_v3  ;;  %v21_v9 = vld [vmem:[%s1450_s0] sm:$0xff]  ;;  %v22_v11 = vld [vmem:[%s1450_s0 + $0x8] sm:$0xff]  ;;  %v498_v14 = vld [vmem:[%s1453_s3 + $0x10] sm:$0xff] }
   0x4   :  { %845 = vmatprep.subr.bf16.mxu0 %v844_v2  ;;  %v496_v12 = vld [vmem:[%s1453_s3] sm:$0xff]  ;;  %v497_v13 = vld [vmem:[%s1453_s3 + $0x8] sm:$0xff]  ;;  %v23_v15 = vld [vmem:[%s1450_s0 + $0x10] sm:$0xff] }
   0x5   :  { %847 = vmatpush1.bf16.msra.mxu0 %v846_v6  ;;  %v849_v16 = vpack.c.bf16 %v497_v13, %v496_v12  ;;  %v499_v17 = vld [vmem:[%s1453_s3 + $0x18] sm:$0xff]  ;;  %v500_v19 = vld [vmem:[%s1453_s3 + $0x20] sm:$0xff]  ;;  %v501_v20 = vld [vmem:[%s1453_s3 + $0x28] sm:$0xff] }
   0x6   :  { %809 = vmatprep.subr.msk.mxu0 %vm168_vm0, %v58_v7  ;;  %v852_v18 = vpack.c.bf16 %v499_v17, %v498_v14  ;;  %v24_v21 = vld [vmem:[%s1450_s0 + $0x18] sm:$0xff]  ;;  %v855_v22 = vpack.c.bf16 %v501_v20, %v500_v19  ;;  %v502_v23 = vld [vmem:[%s1453_s3 + $0x30] sm:$0xff]  ;;  %v25_v25 = vld [vmem:[%s1450_s0 + $0x20] sm:$0xff] }
   0x7   :  { %912 = vmatpush1.bf16.msra.mxu1 %v849_v16  ;;  %v503_v24 = vld [vmem:[%s1453_s3 + $0x38] sm:$0xff]  ;;  %v504_v27 = vld [vmem:[%s1453_s3 + $0x40] sm:$0xff]  ;;  %v505_v28 = vld [vmem:[%s1453_s3 + $0x48] sm:$0xff] }
   0x8   :  { %897 = vmatprep.subr.bf16.mxu1 %v958_v10  ;;  %v858_v26 = vpack.c.bf16 %v503_v24, %v502_v23  ;;  %v26_v29 = vld [vmem:[%s1450_s0 + $0x28] sm:$0xff]  ;;  %v861_v30 = vpack.c.bf16 %v505_v28, %v504_v27  ;;  %v506_v31 = vld [vmem:[%s1453_s3 + $0x50] sm:$0xff]  ;;  %v507_v32 = vld [vmem:[%s1453_s3 + $0x58] sm:$0xff]  ;;  %v61_v27 = vlaneseq }
   0x9   :  { %810 = vmatpush1.msk.msra.mxu0 %vm168_vm0, %v57_v8  ;;  %v27_v33 = vld [vmem:[%s1450_s0 + $0x30] sm:$0xff]  ;;  %v864_v34 = vpack.c.bf16 %v507_v32, %v506_v31  ;;  %v508_v35 = vld [vmem:[%s1453_s3 + $0x60] sm:$0xff]  ;;  %v509_v36 = vld [vmem:[%s1453_s3 + $0x68] sm:$0xff] }
   0xa   :  { %811 = vmatmul.mubr.msk.f32.vlgmr.msra.gmra.mrb[0].mxu0 %vm71_vm1, %v21_v9  ;;  %848 = vmatprep.subr.bf16.mxu0 %v958_v10  ;;  %v28_v37 = vld [vmem:[%s1450_s0 + $0x38] sm:$0xff]  ;;  %v867_v38 = vpack.c.bf16 %v509_v36, %v508_v35  ;;  %v510_v39 = vld [vmem:[%s1453_s3 + $0x70] sm:$0xff]  ;;  %v29_v41 = vld [vmem:[%s1450_s0 + $0x40] sm:$0xff]  ;;  %v62_v28 = vshrl.u32 %v61_v27, 7 }
   0xb   :  { %245 = vmatprep.mubr.f32.mxu0 %v957_v5  ;;  %850 = vmatpush1.bf16.msra.mxu0 %v849_v16  ;;  %v511_v40 = vld [vmem:[%s1453_s3 + $0x78] sm:$0xff]  ;;  %v512_v43 = vld [vmem:[%s1453_s3 + $0x80] sm:$0xff]  ;;  %v513_v44 = vld [vmem:[%s1453_s3 + $0x88] sm:$0xff] }
   0xc   :  { %851 = vmatprep.subr.bf16.mxu0 %v958_v10  ;;  %913 = vmatpush1.bf16.msra.mxu1 %v852_v18  ;;  %v870_v42 = vpack.c.bf16 %v511_v40, %v510_v39  ;;  %v30_v45 = vld [vmem:[%s1450_s0 + $0x48] sm:$0xff]  ;;  %v873_v46 = vpack.c.bf16 %v513_v44, %v512_v43  ;;  %v514_v47 = vld [vmem:[%s1453_s3 + $0x90] sm:$0xff]  ;;  %v515_v48 = vld [vmem:[%s1453_s3 + $0x98] sm:$0xff]  ;;  %v67_v31 = vsub.s32 1, %v62_v28 }
   0xd   :  { %898 = vmatprep.subr.bf16.mxu1 %v958_v10  ;;  %v31_v49 = vld [vmem:[%s1450_s0 + $0x50] sm:$0xff]  ;;  %v876_v50 = vpack.c.bf16 %v515_v48, %v514_v47  ;;  %v516_v51 = vld [vmem:[%s1453_s3 + $0xa0] sm:$0xff]  ;;  %v517_v52 = vld [vmem:[%s1453_s3 + $0xa8] sm:$0xff] }
   0xe   :  { %812 = vmatmul.mubr.msk.f32.gmra.mrb[2].mxu0 %vm71_vm1, %v22_v11  ;;  %v32_v53 = vld [vmem:[%s1450_s0 + $0x58] sm:$0xff]  ;;  %v879_v54 = vpack.c.bf16 %v517_v52, %v516_v51  ;;  %v518_v55 = vld [vmem:[%s1453_s3 + $0xb0] sm:$0xff]  ;;  %v33_v57 = vld [vmem:[%s1450_s0 + $0x60] sm:$0xff] }
   0xf   :  { %251 = vmatprep.mubr.f32.mxu0 %v957_v5  ;;  %853 = vmatpush1.bf16.msra.mxu0 %v852_v18  ;;  %v519_v56 = vld [vmem:[%s1453_s3 + $0xb8] sm:$0xff]  ;;  %v520_v59 = vld [vmem:[%s1453_s3 + $0xc0] sm:$0xff]  ;;  %v521_v60 = vld [vmem:[%s1453_s3 + $0xc8] sm:$0xff] }
  0x10   :  { %854 = vmatprep.subr.bf16.mxu0 %v958_v10  ;;  %914 = vmatpush1.bf16.msra.mxu1 %v855_v22  ;;  %v882_v58 = vpack.c.bf16 %v519_v56, %v518_v55  ;;  %v34_v61 = vld [vmem:[%s1450_s0 + $0x68] sm:$0xff]  ;;  %v885_v62 = vpack.c.bf16 %v521_v60, %v520_v59  ;;  %v522_v63 = vld [vmem:[%s1453_s3 + $0xd0] sm:$0xff]  ;;  %v523_v0 = vld [vmem:[%s1453_s3 + $0xd8] sm:$0xff] }
  0x11   :  { %899 = vmatprep.subr.bf16.mxu1 %v958_v10  ;;  %v35_v1 = vld [vmem:[%s1450_s0 + $0x70] sm:$0xff]  ;;  %v888_v2 = vpack.c.bf16 %v523_v0, %v522_v63  ;;  %v36_v3 = vld [vmem:[%s1450_s0 + $0x78] sm:$0xff]  ;;  %v37_v4 = vld [vmem:[%s1450_s0 + $0x80] sm:$0xff] }
  0x12   :  { %813 = vmatmul.mubr.msk.f32.gmra.mrb[4].mxu0 %vm71_vm1, %v23_v15  ;;  %v38_v6 = vld [vmem:[%s1450_s0 + $0x88] sm:$0xff]  ;;  %v39_v7 = vld [vmem:[%s1450_s0 + $0x90] sm:$0xff]  ;;  %v40_v8 = vld [vmem:[%s1450_s0 + $0x98] sm:$0xff] }
  0x13   :  { %257 = vmatprep.mubr.f32.mxu0 %v957_v5  ;;  %856 = vmatpush1.bf16.msra.mxu0 %v855_v22  ;;  %v41_v9 = vld [vmem:[%s1450_s0 + $0xa0] sm:$0xff]  ;;  %v525_v12 = vld [vmem:[%s1453_s3 + $0xe8] sm:$0xff]  ;;  %v526_v15 = vld [vmem:[%s1453_s3 + $0xf0] sm:$0xff] }
  0x14   :  { %857 = vmatprep.subr.bf16.mxu0 %v958_v10  ;;  %915 = vmatpush1.bf16.msra.mxu1 %v858_v26  ;;  %v524_v11 = vld [vmem:[%s1453_s3 + $0xe0] sm:$0xff]  ;;  %v42_v13 = vld [vmem:[%s1450_s0 + $0xa8] sm:$0xff]  ;;  %v527_v16 = vld [vmem:[%s1453_s3 + $0xf8] sm:$0xff] }
  0x15   :  { %900 = vmatprep.subr.bf16.mxu1 %v958_v10  ;;  %v891_v14 = vpack.c.bf16 %v525_v12, %v524_v11  ;;  %v43_v17 = vld [vmem:[%s1450_s0 + $0xb0] sm:$0xff]  ;;  %v894_v18 = vpack.c.bf16 %v527_v16, %v526_v15  ;;  %v44_v19 = vld [vmem:[%s1450_s0 + $0xb8] sm:$0xff]  ;;  %v45_v20 = vld [vmem:[%s1450_s0 + $0xc0] sm:$0xff] }
  0x16   :  { %814 = vmatmul.mubr.msk.f32.gmra.mrb[6].mxu0 %vm71_vm1, %v24_v21  ;;  %v47_v21 = vld [vmem:[%s1450_s0 + $0xd0] sm:$0xff]  ;;  %v48_v22 = vld [vmem:[%s1450_s0 + $0xd8] sm:$0xff]  ;;  %v49_v23 = vld [vmem:[%s1450_s0 + $0xe0] sm:$0xff] }
  0x17   :  { %263 = vmatprep.mubr.f32.mxu0 %v957_v5  ;;  %859 = vmatpush1.bf16.msra.mxu0 %v858_v26  ;;  %v50_v24 = vld [vmem:[%s1450_s0 + $0xe8] sm:$0xff]  ;;  %v52_v26 = vld [vmem:[%s1450_s0 + $0xf8] sm:$0xff] }
  0x18   :  { %860 = vmatprep.subr.bf16.mxu0 %v958_v10  ;;  %916 = vmatpush1.bf16.msra.mxu1 %v861_v30 }
  0x19   :  { %901 = vmatprep.subr.bf16.mxu1 %v958_v10 }
  0x1a   :  { %815 = vmatmul.mubr.msk.f32.gmra.mrb[8].mxu0 %vm71_vm1, %v25_v25  ;;  %v51_v25 = vld [vmem:[%s1450_s0 + $0xf0] sm:$0xff] }
  0x1b   :  { %269 = vmatprep.mubr.f32.mxu0 %v957_v5  ;;  %862 = vmatpush1.bf16.msra.mxu0 %v861_v30  ;;  %v59_v30 = vld [vmem:[%s1452_s2] sm:$0x3] }
  0x1c   :  { %863 = vmatprep.subr.bf16.mxu0 %v958_v10  ;;  %917 = vmatpush1.bf16.msra.mxu1 %v864_v34 }
  0x1d   :  { %902 = vmatprep.subr.bf16.mxu1 %v958_v10 }
  0x1e   :  { %816 = vmatmul.mubr.msk.f32.gmra.mrb[10].mxu0 %vm71_vm1, %v26_v29  ;;  %v63_v29 = vsub.s32 0, %v62_v28 }
  0x1f   :  { %275 = vmatprep.mubr.f32.mxu0 %v957_v5  ;;  %865 = vmatpush1.bf16.msra.mxu0 %v864_v34 }
  0x20   :  { %866 = vmatprep.subr.bf16.mxu0 %v958_v10  ;;  %918 = vmatpush1.bf16.msra.mxu1 %v867_v38  ;;  %v1301_v32 = vrot.slane %v59_v30, %v63_v29 }
  0x21   :  { %903 = vmatprep.subr.bf16.mxu1 %v958_v10 }
  0x22   :  { %817 = vmatmul.mubr.msk.f32.gmra.mrb[12].mxu0 %vm71_vm1, %v27_v33  ;;  %v1303_v33 = vrot.slane %v59_v30, %v67_v31 }
  0x23   :  { %281 = vmatprep.mubr.f32.mxu0 %v957_v5  ;;  %868 = vmatpush1.bf16.msra.mxu0 %v867_v38 }
  0x24   :  { %869 = vmatprep.subr.bf16.mxu0 %v958_v10  ;;  %919 = vmatpush1.bf16.msra.mxu1 %v870_v42 }
  0x25   :  { %904 = vmatprep.subr.bf16.mxu1 %v958_v10 }
  0x26   :  { %818 = vmatmul.mubr.msk.f32.gmra.mrb[14].mxu0 %vm71_vm1, %v28_v37 }
  0x27   :  { %287 = vmatprep.mubr.f32.mxu0 %v957_v5  ;;  %871 = vmatpush1.bf16.msra.mxu0 %v870_v42 }
  0x28   :  { %872 = vmatprep.subr.bf16.mxu0 %v958_v10  ;;  %920 = vmatpush1.bf16.msra.mxu1 %v873_v46 }
  0x29   :  { %905 = vmatprep.subr.bf16.mxu1 %v958_v10 }
  0x2a   :  { %819 = vmatmul.mubr.msk.f32.gmra.mrb[16].mxu0 %vm71_vm1, %v29_v41 }
  0x2b   :  { %293 = vmatprep.mubr.f32.mxu0 %v957_v5  ;;  %874 = vmatpush1.bf16.msra.mxu0 %v873_v46 }
  0x2c   :  { %875 = vmatprep.subr.bf16.mxu0 %v958_v10  ;;  %921 = vmatpush1.bf16.msra.mxu1 %v876_v50 }
  0x2d   :  { %906 = vmatprep.subr.bf16.mxu1 %v958_v10 }
  0x2e   :  { %820 = vmatmul.mubr.msk.f32.gmra.mrb[18].mxu0 %vm71_vm1, %v30_v45 }
  0x2f   :  { %299 = vmatprep.mubr.f32.mxu0 %v957_v5  ;;  %877 = vmatpush1.bf16.msra.mxu0 %v876_v50 }
  0x30   :  { %878 = vmatprep.subr.bf16.mxu0 %v958_v10  ;;  %922 = vmatpush1.bf16.msra.mxu1 %v879_v54 }
  0x31   :  { %907 = vmatprep.subr.bf16.mxu1 %v958_v10 }
  0x32   :  { %821 = vmatmul.mubr.msk.f32.gmra.mrb[20].mxu0 %vm71_vm1, %v31_v49 }
  0x33   :  { %305 = vmatprep.mubr.f32.mxu0 %v957_v5  ;;  %880 = vmatpush1.bf16.msra.mxu0 %v879_v54 }
  0x34   :  { %881 = vmatprep.subr.bf16.mxu0 %v958_v10  ;;  %923 = vmatpush1.bf16.msra.mxu1 %v882_v58 }
  0x35   :  { %908 = vmatprep.subr.bf16.mxu1 %v958_v10 }
  0x36   :  { %822 = vmatmul.mubr.msk.f32.gmra.mrb[22].mxu0 %vm71_vm1, %v32_v53 }
  0x37   :  { %311 = vmatprep.mubr.f32.mxu0 %v957_v5  ;;  %883 = vmatpush1.bf16.msra.mxu0 %v882_v58 }
  0x38   :  { %884 = vmatprep.subr.bf16.mxu0 %v958_v10  ;;  %924 = vmatpush1.bf16.msra.mxu1 %v885_v62 }
  0x39   :  { %909 = vmatprep.subr.bf16.mxu1 %v958_v10 }
  0x3a   :  { %823 = vmatmul.mubr.msk.f32.gmra.mrb[24].mxu0 %vm71_vm1, %v33_v57 }
  0x3b   :  { %317 = vmatprep.mubr.f32.mxu0 %v957_v5  ;;  %886 = vmatpush1.bf16.msra.mxu0 %v885_v62 }
  0x3c   :  { %887 = vmatprep.subr.bf16.mxu0 %v958_v10  ;;  %925 = vmatpush1.bf16.msra.mxu1 %v888_v2 }
  0x3d   :  { %910 = vmatprep.subr.bf16.mxu1 %v958_v10 }
  0x3e   :  { %824 = vmatmul.mubr.msk.f32.gmra.mrb[26].mxu0 %vm71_vm1, %v34_v61 }
  0x3f   :  { %323 = vmatprep.mubr.f32.mxu0 %v957_v5  ;;  %889 = vmatpush1.bf16.msra.mxu0 %v888_v2 }
  0x40   :  { %890 = vmatprep.subr.bf16.mxu0 %v958_v10  ;;  %926 = vmatpush1.bf16.msra.mxu1 %v891_v14 }
  0x41   :  { %911 = vmatprep.subr.bf16.mxu1 %v958_v10 }
  0x42   :  { %825 = vmatmul.mubr.msk.f32.gmra.mrb[28].mxu0 %vm71_vm1, %v35_v1 }
  0x43   :  { %329 = vmatprep.mubr.f32.mxu0 %v957_v5  ;;  %892 = vmatpush1.bf16.msra.mxu0 %v891_v14 }
  0x44   :  { %893 = vmatprep.subr.bf16.mxu0 %v958_v10  ;;  %927 = vmatpush1.bf16.msra.mxu1 %v894_v18  ;;  %v46_v10 = vld [vmem:[%s1450_s0 + $0xc8] sm:$0xff] }
  0x46   :  { %826 = vmatmul.mubr.msk.f32.gmra.mrb[30].mxu0 %vm71_vm1, %v36_v3 }
  0x47   :  { %335 = vmatprep.mubr.f32.mxu0 %v957_v5  ;;  %895 = vmatpush1.bf16.msra.mxu0 %v894_v18 }
  0x4a   :  { %827 = vmatmul.mubr.msk.f32.gmra.mrb[32].mxu0 %vm71_vm1, %v37_v4 }
  0x4b   :  { %341 = vmatprep.mubr.f32.mxu0 %v957_v5 }
  0x4e   :  { %828 = vmatmul.mubr.msk.f32.gmra.mrb[34].mxu0 %vm71_vm1, %v38_v6 }
  0x4f   :  { %347 = vmatprep.mubr.f32.mxu0 %v957_v5 }
  0x52   :  { %829 = vmatmul.mubr.msk.f32.gmra.mrb[36].mxu0 %vm71_vm1, %v39_v7 }
  0x53   :  { %353 = vmatprep.mubr.f32.mxu0 %v957_v5 }
  0x56   :  { %830 = vmatmul.mubr.msk.f32.gmra.mrb[38].mxu0 %vm71_vm1, %v40_v8 }
  0x57   :  { %359 = vmatprep.mubr.f32.mxu0 %v957_v5 }
  0x5a   :  { %831 = vmatmul.mubr.msk.f32.gmra.mrb[40].mxu0 %vm71_vm1, %v41_v9 }
  0x5b   :  { %365 = vmatprep.mubr.f32.mxu0 %v957_v5 }
  0x5e   :  { %832 = vmatmul.mubr.msk.f32.gmra.mrb[42].mxu0 %vm71_vm1, %v42_v13 }
  0x5f   :  { %371 = vmatprep.mubr.f32.mxu0 %v957_v5 }
  0x62   :  { %833 = vmatmul.mubr.msk.f32.gmra.mrb[44].mxu0 %vm71_vm1, %v43_v17 }
  0x63   :  { %377 = vmatprep.mubr.f32.mxu0 %v957_v5 }
  0x66   :  { %834 = vmatmul.mubr.msk.f32.gmra.mrb[46].mxu0 %vm71_vm1, %v44_v19 }
  0x67   :  { %383 = vmatprep.mubr.f32.mxu0 %v957_v5 }
  0x6a   :  { %835 = vmatmul.mubr.msk.f32.gmra.mrb[48].mxu0 %vm71_vm1, %v45_v20 }
  0x6b   :  { %389 = vmatprep.mubr.f32.mxu0 %v957_v5 }
  0x6e   :  { %836 = vmatmul.mubr.msk.f32.gmra.mrb[50].mxu0 %vm71_vm1, %v46_v10 }
  0x6f   :  { %395 = vmatprep.mubr.f32.mxu0 %v957_v5 }
  0x72   :  { %837 = vmatmul.mubr.msk.f32.gmra.mrb[52].mxu0 %vm71_vm1, %v47_v21 }
  0x73   :  { %401 = vmatprep.mubr.f32.mxu0 %v957_v5 }
  0x76   :  { %838 = vmatmul.mubr.msk.f32.gmra.mrb[54].mxu0 %vm71_vm1, %v48_v22 }
  0x77   :  { %407 = vmatprep.mubr.f32.mxu0 %v957_v5 }
  0x7a   :  { %839 = vmatmul.mubr.msk.f32.gmra.mrb[56].mxu0 %vm71_vm1, %v49_v23 }
  0x7b   :  { %413 = vmatprep.mubr.f32.mxu0 %v957_v5 }
  0x7e   :  { %840 = vmatmul.mubr.msk.f32.gmra.mrb[58].mxu0 %vm71_vm1, %v50_v24 }
  0x7f   :  { %419 = vmatprep.mubr.f32.mxu0 %v957_v5 }
  0x82   :  { %841 = vmatmul.mubr.msk.f32.gmra.mrb[60].mxu0 %vm71_vm1, %v51_v25 }
  0x83   :  { %425 = vmatprep.mubr.f32.mxu0 %v957_v5 }
  0x86   :  { %842 = vmatmul.mubr.msk.f32.gmra.mrb[62].mxu0 %vm71_vm1, %v52_v26 }
  0xdd   :  { %v241_v34 = vpop.f32.mrb[0].mxu0 }
  0xde   :  { %v242_v5 = vadd.f32 %v241_v34, %v1301_v32  ;;  %v243_v35 = vpop.f32.mrb[1].mxu0 }
  0xdf   :  { %v244_v36 = vadd.f32 %v243_v35, %v1303_v33 }
  0xe0   :  { %v432_v39 = vmax.f32 %v242_v5, 0.0 }
  0xe1   :  { %v433_v37 = vmax.f32 %v244_v36, 0.0  ;;  %v247_v38 = vpop.f32.mrb[2].mxu0 }
  0xe2   :  { %v248_v40 = vadd.f32 %v247_v38, %v1301_v32  ;;  %v249_v41 = vpop.f32.mrb[3].mxu0 }
  0xe3   :  { %v250_v42 = vadd.f32 %v249_v41, %v1303_v33  ;;  %599 = vmatprep.mubr.f32.mxu0 %v433_v37 }
  0xe4   :  { %600 = vmatmul.mubr.f32.vlgmr.msra.gmra.mrb[64].mxu0 %v432_v39  ;;  %v434_v45 = vmax.f32 %v248_v40, 0.0 }
  0xe5   :  { %v435_v43 = vmax.f32 %v250_v42, 0.0  ;;  %v253_v44 = vpop.f32.mrb[4].mxu0 }
  0xe6   :  { %v254_v46 = vadd.f32 %v253_v44, %v1301_v32  ;;  %v255_v47 = vpop.f32.mrb[5].mxu0 }
  0xe7   :  { %v256_v48 = vadd.f32 %v255_v47, %v1303_v33  ;;  %604 = vmatprep.mubr.f32.mxu0 %v435_v43 }
  0xe8   :  { %605 = vmatmul.mubr.f32.gmra.mrb[66].mxu0 %v434_v45  ;;  %v436_v51 = vmax.f32 %v254_v46, 0.0 }
  0xe9   :  { %v437_v49 = vmax.f32 %v256_v48, 0.0  ;;  %v259_v50 = vpop.f32.mrb[6].mxu0 }
  0xea   :  { %v260_v52 = vadd.f32 %v259_v50, %v1301_v32  ;;  %v261_v53 = vpop.f32.mrb[7].mxu0 }
  0xeb   :  { %v262_v54 = vadd.f32 %v261_v53, %v1303_v33  ;;  %609 = vmatprep.mubr.f32.mxu0 %v437_v49 }
  0xec   :  { %610 = vmatmul.mubr.f32.gmra.mrb[68].mxu0 %v436_v51  ;;  %v438_v57 = vmax.f32 %v260_v52, 0.0 }
  0xed   :  { %v439_v55 = vmax.f32 %v262_v54, 0.0  ;;  %v265_v56 = vpop.f32.mrb[8].mxu0 }
  0xee   :  { %v266_v58 = vadd.f32 %v265_v56, %v1301_v32  ;;  %v267_v59 = vpop.f32.mrb[9].mxu0 }
  0xef   :  { %v268_v60 = vadd.f32 %v267_v59, %v1303_v33  ;;  %614 = vmatprep.mubr.f32.mxu0 %v439_v55 }
  0xf0   :  { %615 = vmatmul.mubr.f32.gmra.mrb[70].mxu0 %v438_v57  ;;  %v440_v63 = vmax.f32 %v266_v58, 0.0 }
  0xf1   :  { %v441_v61 = vmax.f32 %v268_v60, 0.0  ;;  %v271_v62 = vpop.f32.mrb[10].mxu0 }
  0xf2   :  { %v272_v0 = vadd.f32 %v271_v62, %v1301_v32  ;;  %v273_v1 = vpop.f32.mrb[11].mxu0 }
  0xf3   :  { %v274_v2 = vadd.f32 %v273_v1, %v1303_v33  ;;  %619 = vmatprep.mubr.f32.mxu0 %v441_v61 }
  0xf4   :  { %620 = vmatmul.mubr.f32.gmra.mrb[72].mxu0 %v440_v63  ;;  %v442_v6 = vmax.f32 %v272_v0, 0.0 }
  0xf5   :  { %v443_v3 = vmax.f32 %v274_v2, 0.0  ;;  %v277_v4 = vpop.f32.mrb[12].mxu0 }
  0xf6   :  { %v278_v7 = vadd.f32 %v277_v4, %v1301_v32  ;;  %v279_v8 = vpop.f32.mrb[13].mxu0 }
  0xf7   :  { %v280_v9 = vadd.f32 %v279_v8, %v1303_v33  ;;  %624 = vmatprep.mubr.f32.mxu0 %v443_v3 }
  0xf8   :  { %625 = vmatmul.mubr.f32.gmra.mrb[74].mxu0 %v442_v6  ;;  %v444_v13 = vmax.f32 %v278_v7, 0.0 }
  0xf9   :  { %v445_v11 = vmax.f32 %v280_v9, 0.0  ;;  %v283_v12 = vpop.f32.mrb[14].mxu0 }
  0xfa   :  { %v284_v14 = vadd.f32 %v283_v12, %v1301_v32  ;;  %v285_v15 = vpop.f32.mrb[15].mxu0 }
  0xfb   :  { %629 = vmatprep.mubr.f32.mxu0 %v445_v11  ;;  %v286_v16 = vadd.f32 %v285_v15, %v1303_v33 }
  0xfc   :  { %630 = vmatmul.mubr.f32.gmra.mrb[76].mxu0 %v444_v13  ;;  %v446_v19 = vmax.f32 %v284_v14, 0.0 }
  0xfd   :  { %v289_v17 = vpop.f32.mrb[16].mxu0  ;;  %v447_v18 = vmax.f32 %v286_v16, 0.0 }
  0xfe   :  { %v290_v20 = vadd.f32 %v289_v17, %v1301_v32  ;;  %v291_v10 = vpop.f32.mrb[17].mxu0 }
  0xff   :  { %v292_v21 = vadd.f32 %v291_v10, %v1303_v33  ;;  %634 = vmatprep.mubr.f32.mxu1 %v447_v18 }
 0x100   :  { %635 = vmatmul.mubr.f32.vlgmr.msra.gmra.mrb[0].mxu1 %v446_v19  ;;  %v448_v24 = vmax.f32 %v290_v20, 0.0 }
 0x101   :  { %v449_v22 = vmax.f32 %v292_v21, 0.0  ;;  %v295_v23 = vpop.f32.mrb[18].mxu0 }
 0x102   :  { %v296_v25 = vadd.f32 %v295_v23, %v1301_v32  ;;  %v297_v26 = vpop.f32.mrb[19].mxu0 }
 0x103   :  { %v298_v27 = vadd.f32 %v297_v26, %v1303_v33  ;;  %639 = vmatprep.mubr.f32.mxu1 %v449_v22 }
 0x104   :  { %640 = vmatmul.mubr.f32.gmra.mrb[2].mxu1 %v448_v24  ;;  %v450_v30 = vmax.f32 %v296_v25, 0.0 }
 0x105   :  { %v451_v28 = vmax.f32 %v298_v27, 0.0  ;;  %v301_v29 = vpop.f32.mrb[20].mxu0 }
 0x106   :  { %v302_v31 = vadd.f32 %v301_v29, %v1301_v32  ;;  %v303_v34 = vpop.f32.mrb[21].mxu0 }
 0x107   :  { %v304_v5 = vadd.f32 %v303_v34, %v1303_v33  ;;  %644 = vmatprep.mubr.f32.mxu1 %v451_v28 }
 0x108   :  { %645 = vmatmul.mubr.f32.gmra.mrb[4].mxu1 %v450_v30  ;;  %v452_v37 = vmax.f32 %v302_v31, 0.0 }
 0x109   :  { %v453_v35 = vmax.f32 %v304_v5, 0.0  ;;  %v307_v36 = vpop.f32.mrb[22].mxu0 }
 0x10a   :  { %v308_v38 = vadd.f32 %v307_v36, %v1301_v32  ;;  %v309_v39 = vpop.f32.mrb[23].mxu0 }
 0x10b   :  { %v310_v40 = vadd.f32 %v309_v39, %v1303_v33  ;;  %649 = vmatprep.mubr.f32.mxu1 %v453_v35 }
 0x10c   :  { %650 = vmatmul.mubr.f32.gmra.mrb[6].mxu1 %v452_v37  ;;  %v454_v43 = vmax.f32 %v308_v38, 0.0 }
 0x10d   :  { %v455_v41 = vmax.f32 %v310_v40, 0.0  ;;  %v313_v42 = vpop.f32.mrb[24].mxu0 }
 0x10e   :  { %v314_v44 = vadd.f32 %v313_v42, %v1301_v32  ;;  %v315_v45 = vpop.f32.mrb[25].mxu0 }
 0x10f   :  { %v316_v46 = vadd.f32 %v315_v45, %v1303_v33  ;;  %654 = vmatprep.mubr.f32.mxu1 %v455_v41 }
 0x110   :  { %655 = vmatmul.mubr.f32.gmra.mrb[8].mxu1 %v454_v43  ;;  %v456_v49 = vmax.f32 %v314_v44, 0.0 }
 0x111   :  { %v457_v47 = vmax.f32 %v316_v46, 0.0  ;;  %v319_v48 = vpop.f32.mrb[26].mxu0 }
 0x112   :  { %v320_v50 = vadd.f32 %v319_v48, %v1301_v32  ;;  %v321_v51 = vpop.f32.mrb[27].mxu0 }
 0x113   :  { %v322_v52 = vadd.f32 %v321_v51, %v1303_v33  ;;  %659 = vmatprep.mubr.f32.mxu1 %v457_v47 }
 0x114   :  { %660 = vmatmul.mubr.f32.gmra.mrb[10].mxu1 %v456_v49  ;;  %v458_v55 = vmax.f32 %v320_v50, 0.0 }
 0x115   :  { %v459_v53 = vmax.f32 %v322_v52, 0.0  ;;  %v325_v54 = vpop.f32.mrb[28].mxu0 }
 0x116   :  { %v326_v56 = vadd.f32 %v325_v54, %v1301_v32  ;;  %v327_v57 = vpop.f32.mrb[29].mxu0 }
 0x117   :  { %v328_v58 = vadd.f32 %v327_v57, %v1303_v33  ;;  %664 = vmatprep.mubr.f32.mxu1 %v459_v53 }
 0x118   :  { %665 = vmatmul.mubr.f32.gmra.mrb[12].mxu1 %v458_v55  ;;  %v460_v61 = vmax.f32 %v326_v56, 0.0 }
 0x119   :  { %v461_v59 = vmax.f32 %v328_v58, 0.0  ;;  %v331_v60 = vpop.f32.mrb[30].mxu0 }
 0x11a   :  { %v332_v62 = vadd.f32 %v331_v60, %v1301_v32  ;;  %v333_v63 = vpop.f32.mrb[31].mxu0 }
 0x11b   :  { %v334_v0 = vadd.f32 %v333_v63, %v1303_v33  ;;  %669 = vmatprep.mubr.f32.mxu1 %v461_v59 }
 0x11c   :  { %670 = vmatmul.mubr.f32.gmra.mrb[14].mxu1 %v460_v61  ;;  %v462_v3 = vmax.f32 %v332_v62, 0.0 }
 0x11d   :  { %v463_v1 = vmax.f32 %v334_v0, 0.0  ;;  %v337_v2 = vpop.f32.mrb[32].mxu0 }
 0x11e   :  { %v338_v4 = vadd.f32 %v337_v2, %v1301_v32  ;;  %v339_v6 = vpop.f32.mrb[33].mxu0 }
 0x11f   :  { %v340_v7 = vadd.f32 %v339_v6, %v1303_v33  ;;  %674 = vmatprep.mubr.f32.mxu1 %v463_v1 }
 0x120   :  { %675 = vmatmul.mubr.f32.gmra.mrb[16].mxu1 %v462_v3  ;;  %v464_v11 = vmax.f32 %v338_v4, 0.0 }
 0x121   :  { %v465_v8 = vmax.f32 %v340_v7, 0.0  ;;  %v343_v9 = vpop.f32.mrb[34].mxu0 }
 0x122   :  { %v344_v12 = vadd.f32 %v343_v9, %v1301_v32  ;;  %v345_v13 = vpop.f32.mrb[35].mxu0 }
 0x123   :  { %v346_v14 = vadd.f32 %v345_v13, %v1303_v33  ;;  %679 = vmatprep.mubr.f32.mxu1 %v465_v8 }
 0x124   :  { %680 = vmatmul.mubr.f32.gmra.mrb[18].mxu1 %v464_v11  ;;  %v466_v17 = vmax.f32 %v344_v12, 0.0 }
 0x125   :  { %v467_v15 = vmax.f32 %v346_v14, 0.0  ;;  %v349_v16 = vpop.f32.mrb[36].mxu0 }
 0x126   :  { %v350_v18 = vadd.f32 %v349_v16, %v1301_v32  ;;  %v351_v19 = vpop.f32.mrb[37].mxu0 }
 0x127   :  { %v352_v20 = vadd.f32 %v351_v19, %v1303_v33  ;;  %684 = vmatprep.mubr.f32.mxu1 %v467_v15 }
 0x128   :  { %685 = vmatmul.mubr.f32.gmra.mrb[20].mxu1 %v466_v17  ;;  %v468_v22 = vmax.f32 %v350_v18, 0.0 }
 0x129   :  { %v469_v10 = vmax.f32 %v352_v20, 0.0  ;;  %v355_v21 = vpop.f32.mrb[38].mxu0 }
 0x12a   :  { %v356_v23 = vadd.f32 %v355_v21, %v1301_v32  ;;  %v357_v24 = vpop.f32.mrb[39].mxu0 }
 0x12b   :  { %v358_v25 = vadd.f32 %v357_v24, %v1303_v33  ;;  %689 = vmatprep.mubr.f32.mxu1 %v469_v10 }
 0x12c   :  { %690 = vmatmul.mubr.f32.gmra.mrb[22].mxu1 %v468_v22  ;;  %v470_v28 = vmax.f32 %v356_v23, 0.0 }
 0x12d   :  { %v471_v26 = vmax.f32 %v358_v25, 0.0  ;;  %v361_v27 = vpop.f32.mrb[40].mxu0 }
 0x12e   :  { %v362_v29 = vadd.f32 %v361_v27, %v1301_v32  ;;  %v363_v30 = vpop.f32.mrb[41].mxu0 }
 0x12f   :  { %v364_v31 = vadd.f32 %v363_v30, %v1303_v33  ;;  %694 = vmatprep.mubr.f32.mxu1 %v471_v26 }
 0x130   :  { %695 = vmatmul.mubr.f32.gmra.mrb[24].mxu1 %v470_v28  ;;  %v472_v35 = vmax.f32 %v362_v29, 0.0 }
 0x131   :  { %v473_v34 = vmax.f32 %v364_v31, 0.0  ;;  %v367_v5 = vpop.f32.mrb[42].mxu0 }
 0x132   :  { %v368_v36 = vadd.f32 %v367_v5, %v1301_v32  ;;  %v369_v37 = vpop.f32.mrb[43].mxu0 }
 0x133   :  { %v370_v38 = vadd.f32 %v369_v37, %v1303_v33  ;;  %699 = vmatprep.mubr.f32.mxu1 %v473_v34 }
 0x134   :  { %700 = vmatmul.mubr.f32.gmra.mrb[26].mxu1 %v472_v35  ;;  %v474_v41 = vmax.f32 %v368_v36, 0.0 }
 0x135   :  { %v475_v39 = vmax.f32 %v370_v38, 0.0  ;;  %v373_v40 = vpop.f32.mrb[44].mxu0 }
 0x136   :  { %v374_v42 = vadd.f32 %v373_v40, %v1301_v32  ;;  %v375_v43 = vpop.f32.mrb[45].mxu0 }
 0x137   :  { %v376_v44 = vadd.f32 %v375_v43, %v1303_v33  ;;  %704 = vmatprep.mubr.f32.mxu1 %v475_v39  ;;  %v1372_v39 = vld [vmem:[%s1454_s4] ss:$0 sm:$0xff] }
 0x138   :  { %705 = vmatmul.mubr.f32.gmra.mrb[28].mxu1 %v474_v41  ;;  %v476_v47 = vmax.f32 %v374_v42, 0.0 }
 0x139   :  { %v477_v45 = vmax.f32 %v376_v44, 0.0  ;;  %v379_v46 = vpop.f32.mrb[46].mxu0 }
 0x13a   :  { %v380_v48 = vadd.f32 %v379_v46, %v1301_v32  ;;  %v381_v49 = vpop.f32.mrb[47].mxu0 }
 0x13b   :  { %v382_v50 = vadd.f32 %v381_v49, %v1303_v33  ;;  %709 = vmatprep.mubr.f32.mxu1 %v477_v45 }
 0x13c   :  { %710 = vmatmul.mubr.f32.gmra.mrb[30].mxu1 %v476_v47  ;;  %v478_v53 = vmax.f32 %v380_v48, 0.0 }
 0x13d   :  { %v479_v51 = vmax.f32 %v382_v50, 0.0  ;;  %v385_v52 = vpop.f32.mrb[48].mxu0 }
 0x13e   :  { %v386_v54 = vadd.f32 %v385_v52, %v1301_v32  ;;  %v387_v55 = vpop.f32.mrb[49].mxu0 }
 0x13f   :  { %v388_v56 = vadd.f32 %v387_v55, %v1303_v33  ;;  %714 = vmatprep.mubr.f32.mxu1 %v479_v51 }
 0x140   :  { %715 = vmatmul.mubr.f32.gmra.mrb[32].mxu1 %v478_v53  ;;  %v480_v59 = vmax.f32 %v386_v54, 0.0 }
 0x141   :  { %v481_v57 = vmax.f32 %v388_v56, 0.0  ;;  %v391_v58 = vpop.f32.mrb[50].mxu0 }
 0x142   :  { %v392_v60 = vadd.f32 %v391_v58, %v1301_v32  ;;  %v393_v61 = vpop.f32.mrb[51].mxu0 }
 0x143   :  { %v394_v62 = vadd.f32 %v393_v61, %v1303_v33  ;;  %719 = vmatprep.mubr.f32.mxu1 %v481_v57 }
 0x144   :  { %720 = vmatmul.mubr.f32.gmra.mrb[34].mxu1 %v480_v59  ;;  %v482_v1 = vmax.f32 %v392_v60, 0.0 }
 0x145   :  { %v483_v63 = vmax.f32 %v394_v62, 0.0  ;;  %v397_v0 = vpop.f32.mrb[52].mxu0 }
 0x146   :  { %v398_v2 = vadd.f32 %v397_v0, %v1301_v32  ;;  %v399_v3 = vpop.f32.mrb[53].mxu0 }
 0x147   :  { %v400_v4 = vadd.f32 %v399_v3, %v1303_v33  ;;  %724 = vmatprep.mubr.f32.mxu1 %v483_v63 }
 0x148   :  { %725 = vmatmul.mubr.f32.gmra.mrb[36].mxu1 %v482_v1  ;;  %v484_v8 = vmax.f32 %v398_v2, 0.0 }
 0x149   :  { %v485_v6 = vmax.f32 %v400_v4, 0.0  ;;  %v403_v7 = vpop.f32.mrb[54].mxu0 }
 0x14a   :  { %v404_v9 = vadd.f32 %v403_v7, %v1301_v32  ;;  %v405_v11 = vpop.f32.mrb[55].mxu0 }
 0x14b   :  { %v406_v12 = vadd.f32 %v405_v11, %v1303_v33  ;;  %729 = vmatprep.mubr.f32.mxu1 %v485_v6 }
 0x14c   :  { %730 = vmatmul.mubr.f32.gmra.mrb[38].mxu1 %v484_v8  ;;  %v486_v15 = vmax.f32 %v404_v9, 0.0 }
 0x14d   :  { %v487_v13 = vmax.f32 %v406_v12, 0.0  ;;  %v409_v14 = vpop.f32.mrb[56].mxu0 }
 0x14e   :  { %v410_v16 = vadd.f32 %v409_v14, %v1301_v32  ;;  %v411_v17 = vpop.f32.mrb[57].mxu0 }
 0x14f   :  { %v412_v18 = vadd.f32 %v411_v17, %v1303_v33  ;;  %734 = vmatprep.mubr.f32.mxu1 %v487_v13 }
 0x150   :  { %735 = vmatmul.mubr.f32.gmra.mrb[40].mxu1 %v486_v15  ;;  %v488_v10 = vmax.f32 %v410_v16, 0.0 }
 0x151   :  { %v489_v19 = vmax.f32 %v412_v18, 0.0  ;;  %v415_v20 = vpop.f32.mrb[58].mxu0 }
 0x152   :  { %v416_v21 = vadd.f32 %v415_v20, %v1301_v32  ;;  %v417_v22 = vpop.f32.mrb[59].mxu0 }
 0x153   :  { %v418_v23 = vadd.f32 %v417_v22, %v1303_v33  ;;  %739 = vmatprep.mubr.f32.mxu1 %v489_v19 }
 0x154   :  { %740 = vmatmul.mubr.f32.gmra.mrb[42].mxu1 %v488_v10  ;;  %v490_v26 = vmax.f32 %v416_v21, 0.0 }
 0x155   :  { %v491_v24 = vmax.f32 %v418_v23, 0.0  ;;  %v421_v25 = vpop.f32.mrb[60].mxu0 }
 0x156   :  { %v422_v27 = vadd.f32 %v421_v25, %v1301_v32  ;;  %v423_v28 = vpop.f32.mrb[61].mxu0 }
 0x157   :  { %v424_v29 = vadd.f32 %v423_v28, %v1303_v33  ;;  %744 = vmatprep.mubr.f32.mxu1 %v491_v24 }
 0x158   :  { %745 = vmatmul.mubr.f32.gmra.mrb[44].mxu1 %v490_v26  ;;  %v492_v34 = vmax.f32 %v422_v27, 0.0 }
 0x159   :  { %v493_v30 = vmax.f32 %v424_v29, 0.0  ;;  %v427_v31 = vpop.f32.mrb[62].mxu0 }
 0x15a   :  { %v428_v5 = vadd.f32 %v427_v31, %v1301_v32  ;;  %v429_v35 = vpop.f32.mrb[63].mxu0 }
 0x15b   :  { %v430_v36 = vadd.f32 %v429_v35, %v1303_v33  ;;  %749 = vmatprep.mubr.f32.mxu1 %v493_v30 }
 0x15c   :  { %750 = vmatmul.mubr.f32.gmra.mrb[46].mxu1 %v492_v34  ;;  %v494_v38 = vmax.f32 %v428_v5, 0.0 }
 0x15d   :  { %v495_v37 = vmax.f32 %v430_v36, 0.0 }
 0x15f   :  { %754 = vmatprep.mubr.f32.mxu1 %v495_v37 }
 0x160   :  { %755 = vmatmul.mubr.f32.gmra.mrb[48].mxu1 %v494_v38 }
 0x1b7   :  { %v601_v40 = vpop.f32.mrb[64].mxu0 }
 0x1b8   :  { %v602_v41 = vadd.f32 %v1372_v39, %v601_v40  ;;  %v603_v42 = vpop.f32.mrb[65].mxu0 }
 0x1ba   :  { %761 = vst.msk [vmem:[#allocation2] sm:$0xff] %vm760_vm2, %v602_v41 }
 0x1bb   :  { %v606_v32 = vpop.f32.mrb[66].mxu0 }
 0x1bc   :  { %v607_v33 = vadd.f32 %v1372_v39, %v606_v32  ;;  %v608_v43 = vpop.f32.mrb[67].mxu0 }
 0x1be   :  { %762 = vst.msk [vmem:[#allocation2 + $0x8] sm:$0xff] %vm760_vm2, %v607_v33 }
 0x1bf   :  { %v611_v44 = vpop.f32.mrb[68].mxu0 }
 0x1c0   :  { %v612_v45 = vadd.f32 %v1372_v39, %v611_v44  ;;  %v613_v46 = vpop.f32.mrb[69].mxu0 }
 0x1c2   :  { %763 = vst.msk [vmem:[#allocation2 + $0x10] sm:$0xff] %vm760_vm2, %v612_v45 }
 0x1c3   :  { %v616_v47 = vpop.f32.mrb[70].mxu0 }
 0x1c4   :  { %v617_v48 = vadd.f32 %v1372_v39, %v616_v47  ;;  %v618_v49 = vpop.f32.mrb[71].mxu0 }
 0x1c6   :  { %764 = vst.msk [vmem:[#allocation2 + $0x18] sm:$0xff] %vm760_vm2, %v617_v48 }
 0x1c7   :  { %v621_v50 = vpop.f32.mrb[72].mxu0 }
 0x1c8   :  { %v622_v51 = vadd.f32 %v1372_v39, %v621_v50  ;;  %v623_v52 = vpop.f32.mrb[73].mxu0 }
 0x1ca   :  { %765 = vst.msk [vmem:[#allocation2 + $0x20] sm:$0xff] %vm760_vm2, %v622_v51 }
 0x1cb   :  { %v626_v53 = vpop.f32.mrb[74].mxu0 }
 0x1cc   :  { %v627_v54 = vadd.f32 %v1372_v39, %v626_v53  ;;  %v628_v55 = vpop.f32.mrb[75].mxu0 }
 0x1ce   :  { %766 = vst.msk [vmem:[#allocation2 + $0x28] sm:$0xff] %vm760_vm2, %v627_v54 }
 0x1cf   :  { %v631_v56 = vpop.f32.mrb[76].mxu0 }
 0x1d0   :  { %v632_v57 = vadd.f32 %v1372_v39, %v631_v56  ;;  %v633_v58 = vpop.f32.mrb[77].mxu0 }
 0x1d2   :  { %767 = vst.msk [vmem:[#allocation2 + $0x30] sm:$0xff] %vm760_vm2, %v632_v57 }
 0x1d3   :  { %v636_v59 = vpop.f32.mrb[0].mxu1 }
 0x1d4   :  { %v637_v60 = vadd.f32 %v1372_v39, %v636_v59  ;;  %v638_v61 = vpop.f32.mrb[1].mxu1 }
 0x1d6   :  { %768 = vst.msk [vmem:[#allocation2 + $0x38] sm:$0xff] %vm760_vm2, %v637_v60 }
 0x1d7   :  { %v641_v62 = vpop.f32.mrb[2].mxu1 }
 0x1d8   :  { %v642_v63 = vadd.f32 %v1372_v39, %v641_v62  ;;  %v643_v0 = vpop.f32.mrb[3].mxu1 }
 0x1da   :  { %769 = vst.msk [vmem:[#allocation2 + $0x40] sm:$0xff] %vm760_vm2, %v642_v63 }
 0x1db   :  { %v646_v1 = vpop.f32.mrb[4].mxu1 }
 0x1dc   :  { %v647_v2 = vadd.f32 %v1372_v39, %v646_v1  ;;  %v648_v3 = vpop.f32.mrb[5].mxu1 }
 0x1de   :  { %770 = vst.msk [vmem:[#allocation2 + $0x48] sm:$0xff] %vm760_vm2, %v647_v2 }
 0x1df   :  { %v651_v4 = vpop.f32.mrb[6].mxu1 }
 0x1e0   :  { %v652_v6 = vadd.f32 %v1372_v39, %v651_v4  ;;  %v653_v7 = vpop.f32.mrb[7].mxu1 }
 0x1e2   :  { %771 = vst.msk [vmem:[#allocation2 + $0x50] sm:$0xff] %vm760_vm2, %v652_v6 }
 0x1e3   :  { %v656_v8 = vpop.f32.mrb[8].mxu1 }
 0x1e4   :  { %v657_v9 = vadd.f32 %v1372_v39, %v656_v8  ;;  %v658_v11 = vpop.f32.mrb[9].mxu1 }
 0x1e6   :  { %772 = vst.msk [vmem:[#allocation2 + $0x58] sm:$0xff] %vm760_vm2, %v657_v9 }
 0x1e7   :  { %v661_v12 = vpop.f32.mrb[10].mxu1 }
 0x1e8   :  { %v662_v13 = vadd.f32 %v1372_v39, %v661_v12  ;;  %v663_v14 = vpop.f32.mrb[11].mxu1 }
 0x1ea   :  { %773 = vst.msk [vmem:[#allocation2 + $0x60] sm:$0xff] %vm760_vm2, %v662_v13 }
 0x1eb   :  { %v666_v15 = vpop.f32.mrb[12].mxu1 }
 0x1ec   :  { %v667_v16 = vadd.f32 %v1372_v39, %v666_v15  ;;  %v668_v17 = vpop.f32.mrb[13].mxu1 }
 0x1ee   :  { %774 = vst.msk [vmem:[#allocation2 + $0x68] sm:$0xff] %vm760_vm2, %v667_v16 }
 0x1ef   :  { %v671_v18 = vpop.f32.mrb[14].mxu1 }
 0x1f0   :  { %v672_v19 = vadd.f32 %v1372_v39, %v671_v18  ;;  %v673_v20 = vpop.f32.mrb[15].mxu1 }
 0x1f2   :  { %775 = vst.msk [vmem:[#allocation2 + $0x70] sm:$0xff] %vm760_vm2, %v672_v19 }
 0x1f3   :  { %v676_v10 = vpop.f32.mrb[16].mxu1 }
 0x1f4   :  { %v677_v21 = vadd.f32 %v1372_v39, %v676_v10  ;;  %v678_v22 = vpop.f32.mrb[17].mxu1 }
 0x1f6   :  { %776 = vst.msk [vmem:[#allocation2 + $0x78] sm:$0xff] %vm760_vm2, %v677_v21 }
 0x1f7   :  { %v681_v23 = vpop.f32.mrb[18].mxu1 }
 0x1f8   :  { %v682_v24 = vadd.f32 %v1372_v39, %v681_v23  ;;  %v683_v25 = vpop.f32.mrb[19].mxu1 }
 0x1fa   :  { %777 = vst.msk [vmem:[#allocation2 + $0x80] sm:$0xff] %vm760_vm2, %v682_v24 }
 0x1fb   :  { %v686_v26 = vpop.f32.mrb[20].mxu1 }
 0x1fc   :  { %v687_v27 = vadd.f32 %v1372_v39, %v686_v26  ;;  %v688_v28 = vpop.f32.mrb[21].mxu1 }
 0x1fe   :  { %778 = vst.msk [vmem:[#allocation2 + $0x88] sm:$0xff] %vm760_vm2, %v687_v27 }
 0x1ff   :  { %v691_v29 = vpop.f32.mrb[22].mxu1 }
 0x200   :  { %v692_v30 = vadd.f32 %v1372_v39, %v691_v29  ;;  %v693_v31 = vpop.f32.mrb[23].mxu1 }
 0x202   :  { %779 = vst.msk [vmem:[#allocation2 + $0x90] sm:$0xff] %vm760_vm2, %v692_v30 }
 0x203   :  { %v696_v34 = vpop.f32.mrb[24].mxu1 }
 0x204   :  { %v697_v5 = vadd.f32 %v1372_v39, %v696_v34  ;;  %v698_v35 = vpop.f32.mrb[25].mxu1 }
 0x206   :  { %780 = vst.msk [vmem:[#allocation2 + $0x98] sm:$0xff] %vm760_vm2, %v697_v5 }
 0x207   :  { %v701_v36 = vpop.f32.mrb[26].mxu1 }
 0x208   :  { %v702_v37 = vadd.f32 %v1372_v39, %v701_v36  ;;  %v703_v38 = vpop.f32.mrb[27].mxu1 }
 0x20a   :  { %781 = vst.msk [vmem:[#allocation2 + $0xa0] sm:$0xff] %vm760_vm2, %v702_v37 }
 0x20b   :  { %v706_v40 = vpop.f32.mrb[28].mxu1 }
 0x20c   :  { %v707_v41 = vadd.f32 %v1372_v39, %v706_v40  ;;  %v708_v42 = vpop.f32.mrb[29].mxu1 }
 0x20e   :  { %782 = vst.msk [vmem:[#allocation2 + $0xa8] sm:$0xff] %vm760_vm2, %v707_v41 }
 0x20f   :  { %v711_v32 = vpop.f32.mrb[30].mxu1 }
 0x210   :  { %v712_v33 = vadd.f32 %v1372_v39, %v711_v32  ;;  %v713_v43 = vpop.f32.mrb[31].mxu1 }
 0x212   :  { %783 = vst.msk [vmem:[#allocation2 + $0xb0] sm:$0xff] %vm760_vm2, %v712_v33 }
 0x213   :  { %v716_v44 = vpop.f32.mrb[32].mxu1 }
 0x214   :  { %v717_v45 = vadd.f32 %v1372_v39, %v716_v44  ;;  %v718_v46 = vpop.f32.mrb[33].mxu1 }
 0x216   :  { %784 = vst.msk [vmem:[#allocation2 + $0xb8] sm:$0xff] %vm760_vm2, %v717_v45 }
 0x217   :  { %v721_v47 = vpop.f32.mrb[34].mxu1 }
 0x218   :  { %v722_v48 = vadd.f32 %v1372_v39, %v721_v47  ;;  %v723_v49 = vpop.f32.mrb[35].mxu1 }
 0x21a   :  { %785 = vst.msk [vmem:[#allocation2 + $0xc0] sm:$0xff] %vm760_vm2, %v722_v48 }
 0x21b   :  { %v726_v50 = vpop.f32.mrb[36].mxu1 }
 0x21c   :  { %v727_v51 = vadd.f32 %v1372_v39, %v726_v50  ;;  %v728_v52 = vpop.f32.mrb[37].mxu1 }
 0x21e   :  { %786 = vst.msk [vmem:[#allocation2 + $0xc8] sm:$0xff] %vm760_vm2, %v727_v51 }
 0x21f   :  { %v731_v53 = vpop.f32.mrb[38].mxu1 }
 0x220   :  { %v732_v54 = vadd.f32 %v1372_v39, %v731_v53  ;;  %v733_v55 = vpop.f32.mrb[39].mxu1 }
 0x222   :  { %787 = vst.msk [vmem:[#allocation2 + $0xd0] sm:$0xff] %vm760_vm2, %v732_v54 }
 0x223   :  { %v736_v56 = vpop.f32.mrb[40].mxu1 }
 0x224   :  { %v737_v57 = vadd.f32 %v1372_v39, %v736_v56  ;;  %v738_v58 = vpop.f32.mrb[41].mxu1 }
 0x226   :  { %788 = vst.msk [vmem:[#allocation2 + $0xd8] sm:$0xff] %vm760_vm2, %v737_v57 }
 0x227   :  { %v741_v59 = vpop.f32.mrb[42].mxu1 }
 0x228   :  { %v742_v60 = vadd.f32 %v1372_v39, %v741_v59  ;;  %v743_v61 = vpop.f32.mrb[43].mxu1 }
 0x22a   :  { %789 = vst.msk [vmem:[#allocation2 + $0xe0] sm:$0xff] %vm760_vm2, %v742_v60 }
 0x22b   :  { %v746_v62 = vpop.f32.mrb[44].mxu1 }
 0x22c   :  { %v747_v63 = vadd.f32 %v1372_v39, %v746_v62  ;;  %v748_v0 = vpop.f32.mrb[45].mxu1 }
 0x22e   :  { %790 = vst.msk [vmem:[#allocation2 + $0xe8] sm:$0xff] %vm760_vm2, %v747_v63 }
 0x22f   :  { %v751_v1 = vpop.f32.mrb[46].mxu1 }
 0x230   :  { %v752_v2 = vadd.f32 %v1372_v39, %v751_v1  ;;  %v753_v3 = vpop.f32.mrb[47].mxu1 }
 0x232   :  { %791 = vst.msk [vmem:[#allocation2 + $0xf0] sm:$0xff] %vm760_vm2, %v752_v2 }
 0x233   :  { %v756_v4 = vpop.f32.mrb[48].mxu1 }
 0x234   :  { %v757_v6 = vadd.f32 %v1372_v39, %v756_v4  ;;  %v758_v7 = vpop.f32.mrb[49].mxu1 }
 0x236   :  { %792 = vst.msk [vmem:[#allocation2 + $0xf8] sm:$0xff] %vm760_vm2, %v757_v6 }
 0x237   :  { %797 = vsyncadd [#allocation3], 4064  ;;  %s959_s4 = smov [#allocation2]  }
 0x238   :  { %s798_s29 = sshll.u32 %s959_s4, 4  ;;  %s799_s29 = int_to_ptr.vmem [resolvable:$true] %s798_s29 }
 0x239   :  { %s933_s30 = scalar_lea.vmem %s799_s29, 32  ;;  %s937_s6 = scalar_lea.vmem %s799_s29, 4096 }
 0x23a   :  { %p934_p0 = scmp.ne.s32.totalorder %s799_s29, %s933_s30  ;;  %p938_p1 = scmp.lt.s32.totalorder %s799_s29, %s799_s29 }
 0x23b   :  { %p939_p2 = scmp.lt.s32.totalorder %s937_s6, %s933_s30 }
 0x23d   :  { %p940_p3 = por %p939_p2, %p938_p1 }
 0x23f   :  { %p941_p4 = pnand %p940_p3, %p934_p0 }
 0x241   :  { %944 = shalt.err (!%p941_p4)
}
 0x242   :  { %s945_s1 = scalar_lea.hbm %s1455_s5, 32 }
 0x243   :  { %p946_p5 = scmp.ne.s32.totalorder %s1455_s5, %s945_s1  ;;  %p949_p6 = scmp.lt.u32.totalorder %s945_s1, %s1455_s5 }
 0x245   :  { %p951_p7 = pnand %p949_p6, %p946_p5 }
 0x247   :  { %954 = shalt.err (!%p951_p7)
}
 0x248   :  { %s960_s12 = smov 32   ;;  %s961_s13 = smov 2  }
 0x249   :  { %804 = dma.vmem_to_hbm [thread:$0]  %s799_s29, 32, %s1455_s5, [#allocation3], %s960_s12, %s960_s12, %s961_s13  }
 0x24a   :  { %955 = dma.done.wait [#allocation3], 4096  }
 0x24b   :  { %956 = vsyncadd [#allocation3], 4294963200 }
 0x24c   :  { %808 = vsyncpa [#allocation3], 1 }

</bundles_post_ra>
